<compile_context>
chip_gen: v7x
topology: tpu7x:2x2x1
jax: 0.10.0
libtpu: 0.0.40
codegen_flags: <defaults>
</compile_context>

<pallas_src>
import functools

import jax
import jax.numpy as jnp
from jax.experimental import pallas as pl
from jax.experimental.pallas import tpu as pltpu


def _round_up(x: int, m: int) -> int:
    return ((x + m - 1) // m) * m


def _mlp_kernel(x_ref, w1_ref, b1_ref, w2_ref, b2_ref, o_ref):
    # Two MXU matmuls + bias adds + ReLU; everything resident in VMEM.
    x = x_ref[...]                                        # (bm, D)
    h = jnp.dot(x, w1_ref[...],
                preferred_element_type=jnp.float32)       # (bm, H_pad)
    h = jnp.maximum(h + b1_ref[...], 0.0)                 # ReLU, broadcast (1, H_pad)
    y = jnp.dot(h, w2_ref[...],
                preferred_element_type=jnp.float32)       # (bm, C)   narrow output
    o_ref[...] = (y + b2_ref[...]).astype(o_ref.dtype)    # store only real columns


def prepare_params(w1, b1, w2, b2):
    """One-time param prep: pad hidden dim to a multiple of 128 (zero pad => math no-op).

    w1: (D, 5), b1: (1, 5) or (5,), w2: (5, 3), b2: (1, 3) or (3,)
    (weights already in (in, out) layout, i.e. transposed vs. PyTorch storage).
    """
    D, H = w1.shape
    _, C = w2.shape
    H_pad = _round_up(H, 128)
    w1_p = jnp.pad(w1.astype(jnp.float32), ((0, 0), (0, H_pad - H)))
    b1_p = jnp.pad(jnp.reshape(b1, (1, H)).astype(jnp.float32),
                   ((0, 0), (0, H_pad - H)))
    w2_p = jnp.pad(w2.astype(jnp.float32), ((0, H_pad - H), (0, 0)))
    b2_p = jnp.reshape(b2, (1, C)).astype(jnp.float32)
    return w1_p, b1_p, w2_p, b2_p


# Conservative per-step VMEM budget for the tile-size choice: fits v5e's 16 MiB
# scoped default and leaves headroom under v7x's 64 MiB physical VMEM.
_VMEM_TILE_BUDGET = 12 << 20


def _choose_bm(B, D, C, H_pad, block_batch):
    # VMEM bytes per batch row: double-buffered x and out tiles plus the
    # implicit f32 hidden intermediate (with headroom).
    per_row = 4 * (2 * D + 2 * C + 2 * H_pad)
    max_rows = max(8, _VMEM_TILE_BUDGET // per_row)
    bm = min(block_batch, max_rows)
    # Ensure >= 2 grid steps so the "parallel" axis shards across v7x's 2 TCs.
    if B > 16:
        bm = min(bm, _round_up(pl.cdiv(B, 2), 8))
    if B >= 8:
        bm = min(bm, (B // 8) * 8)     # stay within the array
        bm = max(8, (bm // 8) * 8)     # multiple of 8 (sublane)
    else:
        bm = B                          # single block == full batch dim
    return bm


def net10_3class_forward(x, w1_p, b1_p, w2_p, b2_p, *, block_batch: int = 8192):
    """Forward pass of Net10_3class. x: (B, D) float32 -> (B, 3) float32."""
    B, D = x.shape
    H_pad = w1_p.shape[1]
    C = w2_p.shape[1]

    bm = _choose_bm(B, D, C, H_pad, block_batch)
    grid = (pl.cdiv(B, bm),)

    # Explicit VMEM budget: double-buffered x/out tiles, weight blocks (2 bufs),
    # and the implicit (bm, H_pad) f32 hidden temp, with 2x headroom.
    vmem_need = 4 * (
        2 * bm * D
        + 2 * bm * C
        + 2 * (D * H_pad + H_pad + H_pad * C + C)
        + 2 * bm * H_pad
    )
    vmem_limit = int(min(max(2 * vmem_need, 8 << 20), 32 << 20))

    cost = pl.CostEstimate(
        flops=2 * B * (D * H_pad + H_pad * C),
        transcendentals=0,
        bytes_accessed=4 * (B * D + B * C + D * H_pad + H_pad + H_pad * C + C),
    )

    return pl.pallas_call(
        _mlp_kernel,
        out_shape=jax.ShapeDtypeStruct((B, C), x.dtype),
        grid=grid,
        in_specs=[
            pl.BlockSpec((bm, D), lambda i: (i, 0)),        # stream x over batch
            pl.BlockSpec((D, H_pad), lambda i: (0, 0)),     # weights: constant maps,
            pl.BlockSpec((1, H_pad), lambda i: (0, 0)),     # VMEM-resident across grid
            pl.BlockSpec((H_pad, C), lambda i: (0, 0)),
            pl.BlockSpec((1, C), lambda i: (0, 0)),
        ],
        out_specs=pl.BlockSpec((bm, C), lambda i: (i, 0)),  # narrow (B, 3) writeback
        compiler_params=pltpu.CompilerParams(
            dimension_semantics=("parallel",),              # megacore on v7x
            vmem_limit_bytes=vmem_limit,
        ),
        cost_estimate=cost,
    )(x, w1_p, b1_p, w2_p, b2_p)


def _init_params(key, input_dim, hidden=5, n_classes=3):
    # Deterministic synthetic init (uniform ~ PyTorch's default Linear bounds).
    k1, k2, k3, k4 = jax.random.split(key, 4)
    bound1 = 1.0 / jnp.sqrt(input_dim)
    bound2 = 1.0 / jnp.sqrt(hidden)
    # PyTorch stores W as (out, in); we keep the transposed (in, out) layout.
    w1 = jax.random.uniform(k1, (input_dim, hidden), jnp.float32, -bound1, bound1)
    b1 = jax.random.uniform(k2, (1, hidden), jnp.float32, -bound1, bound1)
    w2 = jax.random.uniform(k3, (hidden, n_classes), jnp.float32, -bound2, bound2)
    b2 = jax.random.uniform(k4, (1, n_classes), jnp.float32, -bound2, bound2)
    return w1, b1, w2, b2


if __name__ == "__main__":
    key = jax.random.PRNGKey(0)
    kx, kp = jax.random.split(key)

    batch, input_dim = 256, 32
    x = jax.random.normal(kx, (batch, input_dim), jnp.float32)
    w1, b1, w2, b2 = _init_params(kp, input_dim)

    # Pad params once at init (not per forward call).
    params = prepare_params(w1, b1, w2, b2)

    # batch=256 -> bm=128, grid=(2,): exercises the pipelined / 2-step path.
    fwd = jax.jit(functools.partial(net10_3class_forward, block_batch=8192))
    out = fwd(x, *params)
    out = jax.block_until_ready(out)

    # Pure-JAX reference check of the forward semantics.
    ref = jnp.maximum(x @ w1 + b1, 0.0) @ w2 + b2
    assert out.shape == (batch, 3)
    assert jnp.allclose(out, ref, atol=1e-5, rtol=1e-5)

    print("KERNEL_OK")
</pallas_src>

<mosaic_0001>
module attributes {stable_mosaic.version = 11 : i64} {
  func.func @_mlp_kernel(%arg0: i32, %arg1: memref<128x32xf32, #tpu.memory_space<vmem>>, %arg2: memref<32x128xf32, #tpu.memory_space<vmem>>, %arg3: memref<1x128xf32, #tpu.memory_space<vmem>>, %arg4: memref<128x3xf32, #tpu.memory_space<vmem>>, %arg5: memref<1x3xf32, #tpu.memory_space<vmem>>, %arg6: memref<128x3xf32, #tpu.memory_space<vmem>>) attributes {dimension_semantics = [#tpu.dimension_semantics<parallel>], iteration_bounds = array<i64: 2>, scalar_prefetch = 0 : i64, scratch_operands = 0 : i64, tpu.core_type = #tpu.core_type<tc>, window_params = [{transform_indices = @transform_0, window_bounds = array<i64: 128, 32>}, {pipeline_mode = #tpu.pipeline_mode<synchronous>, transform_indices = @transform_1, window_bounds = array<i64: 32, 128>}, {pipeline_mode = #tpu.pipeline_mode<synchronous>, transform_indices = @transform_2, window_bounds = array<i64: 1, 128>}, {pipeline_mode = #tpu.pipeline_mode<synchronous>, transform_indices = @transform_3, window_bounds = array<i64: 128, 3>}, {pipeline_mode = #tpu.pipeline_mode<synchronous>, transform_indices = @transform_4, window_bounds = array<i64: 1, 3>}, {transform_indices = @transform_5, window_bounds = array<i64: 128, 3>}]} {
    %c0 = arith.constant 0 : index
    %c0_0 = arith.constant 0 : index
    %0 = vector.load %arg1[%c0, %c0_0] : memref<128x32xf32, #tpu.memory_space<vmem>>, vector<128x32xf32>
    %c0_1 = arith.constant 0 : index
    %c0_2 = arith.constant 0 : index
    %1 = vector.load %arg2[%c0_1, %c0_2] : memref<32x128xf32, #tpu.memory_space<vmem>>, vector<32x128xf32>
    %cst = arith.constant dense<0.000000e+00> : vector<128x128xf32>
    %2 = tpu.matmul %0, %1, %cst {dimension_numbers = #tpu.dot_dimension_numbers<[1], [0], [0], [1], [0, 0, 1, 1], [], []>} : vector<128x32xf32>, vector<32x128xf32>, vector<128x128xf32> -> vector<128x128xf32>
    %c0_3 = arith.constant 0 : index
    %c0_4 = arith.constant 0 : index
    %3 = vector.load %arg3[%c0_3, %c0_4] : memref<1x128xf32, #tpu.memory_space<vmem>>, vector<1x128xf32>
    %4 = vector.broadcast %3 : vector<1x128xf32> to vector<128x128xf32>
    %5 = arith.addf %2, %4 : vector<128x128xf32>
    %cst_5 = arith.constant 0.000000e+00 : f32
    %6 = vector.broadcast %cst_5 : f32 to vector<128x128xf32>
    %7 = arith.maximumf %5, %6 : vector<128x128xf32>
    %c0_6 = arith.constant 0 : index
    %c0_7 = arith.constant 0 : index
    %8 = vector.load %arg4[%c0_6, %c0_7] : memref<128x3xf32, #tpu.memory_space<vmem>>, vector<128x3xf32>
    %cst_8 = arith.constant dense<0.000000e+00> : vector<128x3xf32>
    %9 = tpu.matmul %7, %8, %cst_8 {dimension_numbers = #tpu.dot_dimension_numbers<[1], [0], [0], [1], [0, 0, 1, 1], [], []>} : vector<128x128xf32>, vector<128x3xf32>, vector<128x3xf32> -> vector<128x3xf32>
    %c0_9 = arith.constant 0 : index
    %c0_10 = arith.constant 0 : index
    %10 = vector.load %arg5[%c0_9, %c0_10] : memref<1x3xf32, #tpu.memory_space<vmem>>, vector<1x3xf32>
    %11 = vector.broadcast %10 : vector<1x3xf32> to vector<128x3xf32>
    %12 = arith.addf %9, %11 : vector<128x3xf32>
    %c0_11 = arith.constant 0 : index
    %c0_12 = arith.constant 0 : index
    %13 = vector.load %arg6[%c0_11, %c0_12] : memref<128x3xf32, #tpu.memory_space<vmem>>, vector<128x3xf32>
    tpu.vector_store %arg6[%c0_11, %c0_12], %12 {strides = array<i32>} : memref<128x3xf32, #tpu.memory_space<vmem>>, vector<128x3xf32>,
    return
  }
  func.func @transform_0(%arg0: i32) -> (i32, i32) {
    %c0_i32 = arith.constant 0 : i32
    %c0_i32_0 = arith.constant 0 : i32
    return %arg0, %c0_i32 : i32, i32
  }
  func.func @transform_1(%arg0: i32) -> (i32, i32) {
    %c0_i32 = arith.constant 0 : i32
    %c0_i32_0 = arith.constant 0 : i32
    %c0_i32_1 = arith.constant 0 : i32
    return %c0_i32, %c0_i32_0 : i32, i32
  }
  func.func @transform_2(%arg0: i32) -> (i32, i32) {
    %c0_i32 = arith.constant 0 : i32
    %c0_i32_0 = arith.constant 0 : i32
    %c0_i32_1 = arith.constant 0 : i32
    return %c0_i32, %c0_i32_0 : i32, i32
  }
  func.func @transform_3(%arg0: i32) -> (i32, i32) {
    %c0_i32 = arith.constant 0 : i32
    %c0_i32_0 = arith.constant 0 : i32
    %c0_i32_1 = arith.constant 0 : i32
    return %c0_i32, %c0_i32_0 : i32, i32
  }
  func.func @transform_4(%arg0: i32) -> (i32, i32) {
    %c0_i32 = arith.constant 0 : i32
    %c0_i32_0 = arith.constant 0 : i32
    %c0_i32_1 = arith.constant 0 : i32
    return %c0_i32, %c0_i32_0 : i32, i32
  }
  func.func @transform_5(%arg0: i32) -> (i32, i32) {
    %c0_i32 = arith.constant 0 : i32
    %c0_i32_0 = arith.constant 0 : i32
    return %arg0, %c0_i32 : i32, i32
  }
}

</mosaic_0001>

<bundles_post_ra>
// kernel: net10_3class_forward.1
= control target key start
LH: loop header
LB: loop body
LE: loop exit
PB: predicated region body
PF: predicated region fallthrough
CT: control target
= control target key end

     0   :  { %s977_s18 = smov 0   ;;  %s1135_s0 = inlined_call_operand.vmem [shape: f32[256,32], index: 0, kind: input, shape index: {}]   ;;  %s1136_s1 = inlined_call_operand.vmem [shape: f32[32,128], index: 1, kind: input, shape index: {}]   ;;  %s1137_s2 = inlined_call_operand.vmem [shape: f32[1,128], index: 2, kind: input, shape index: {}]   ;;  %s1138_s3 = inlined_call_operand.vmem [shape: f32[128,3], index: 3, kind: input, shape index: {}]   ;;  %s1139_s4 = inlined_call_operand.vmem [shape: f32[1,3], index: 4, kind: input, shape index: {}]   ;;  %s1140_s5 = inlined_call_operand.vmem [shape: f32[256,3], index: 5, kind: output, shape index: {}]  }
   0x1 LB: > { %s706_s19 = sadd.s32 4294967295, %s945_s18   ;;  %p710_p0 = scmp.ge.s32.totalorder %s945_s18, 1  ;;  %s945_s18 = sphi %s977_s18, %s15_s18  }
   0x2   : > { %p188_p1 = scmp.lt.s32.totalorder %s945_s18, 3 }
   0x4   : > { %p189_p2 = pnand %p710_p0, %p188_p1 }
   0x5   : > { %v244_v0 = vld [vmem:[%s1136_s1] sm:$0xff] (!%p189_p2)  ;;  %v245_v1 = vld [vmem:[%s1136_s1 + $0x8] sm:$0xff] (!%p189_p2)  ;;  %v246_v2 = vld [vmem:[%s1136_s1 + $0x10] sm:$0xff] (!%p189_p2)  ;;  %s711_s26 = sshll.u32 (!%p189_p2), %s706_s19, 4  ;;  %vm255_vm0 = vcmask (!%p189_p2), 261120   ;;  %vm633_vm1 = vcmask (!%p189_p2), 23552  }
   0x6   : > { %192 = sbr.rel (%p189_p2) target bundleno = 480 (0x1e0), region = 40  ;;  %v875_v3 = vpack.c.bf16 (!%p189_p2), %v245_v1, %v244_v0  ;;  %v247_v4 = vld [vmem:[%s1136_s1 + $0x18] sm:$0xff] (!%p189_p2)  ;;  %p217_p3 = scmp.lt.s32.totalorder (!%p189_p2), %s711_s26, 31  ;;  %v465_v5 = vld [vmem:[%s1138_s3] sm:$0xff] (!%p189_p2)  ;;  %v466_v6 = vld [vmem:[%s1138_s3 + $0x8] sm:$0xff] (!%p189_p2) }
   0x7   : > { %v879_v7 = vpack.c.bf16 (!%p189_p2), %v247_v4, %v246_v2  ;;  %v883_v8 = vpack.c.bf16 (!%p189_p2), %v466_v6, %v465_v5  ;;  %v467_v9 = vld [vmem:[%s1138_s3 + $0x10] sm:$0xff] (!%p189_p2)  ;;  %v468_v10 = vld [vmem:[%s1138_s3 + $0x18] sm:$0xff] (!%p189_p2)  ;;  %v469_v12 = vld [vmem:[%s1138_s3 + $0x20] sm:$0xff] (!%p189_p2) }
   0x8   : > { %876 = vmatprep.subr.bf16.mxu0 (!%p189_p2), %v875_v3  ;;  %v887_v11 = vpack.c.bf16 (!%p189_p2), %v468_v10, %v467_v9  ;;  %v470_v13 = vld [vmem:[%s1138_s3 + $0x28] sm:$0xff] (!%p189_p2)  ;;  %v471_v18 = vld [vmem:[%s1138_s3 + $0x30] sm:$0xff] (!%p189_p2)  ;;  %v472_v19 = vld [vmem:[%s1138_s3 + $0x38] sm:$0xff] (!%p189_p2) }
   0x9   : > { %878 = vmatpush3.bf16.msra.mxu0 (!%p189_p2), %v875_v3  ;;  %915 = vmatprep.subr.bf16.mxu1 (!%p189_p2), %v883_v8  ;;  %v891_v16 = vpack.c.bf16 (!%p189_p2), %v470_v13, %v469_v12  ;;  %v895_v21 = vpack.c.bf16 (!%p189_p2), %v472_v19, %v471_v18  ;;  %v473_v23 = vld [vmem:[%s1138_s3 + $0x40] sm:$0xff] (!%p189_p2)  ;;  %v474_v24 = vld [vmem:[%s1138_s3 + $0x48] sm:$0xff] (!%p189_p2)  ;;  %v475_v28 = vld [vmem:[%s1138_s3 + $0x50] sm:$0xff] (!%p189_p2) }
   0xa   : > { %880 = vmatprep.subr.bf16.mxu0 (!%p189_p2), %v879_v7  ;;  %923 = vmatpush3.bf16.msra.mxu1 (!%p189_p2), %v883_v8  ;;  %v899_v26 = vpack.c.bf16 (!%p189_p2), %v474_v24, %v473_v23  ;;  %v476_v29 = vld [vmem:[%s1138_s3 + $0x58] sm:$0xff] (!%p189_p2)  ;;  %v477_v33 = vld [vmem:[%s1138_s3 + $0x60] sm:$0xff] (!%p189_p2)  ;;  %v478_v34 = vld [vmem:[%s1138_s3 + $0x68] sm:$0xff] (!%p189_p2) }
   0xb   : > { %916 = vmatprep.subr.bf16.mxu1 (!%p189_p2), %v887_v11  ;;  %v903_v31 = vpack.c.bf16 (!%p189_p2), %v476_v29, %v475_v28  ;;  %v907_v36 = vpack.c.bf16 (!%p189_p2), %v478_v34, %v477_v33  ;;  %v479_v43 = vld [vmem:[%s1138_s3 + $0x70] sm:$0xff] (!%p189_p2)  ;;  %v480_v44 = vld [vmem:[%s1138_s3 + $0x78] sm:$0xff] (!%p189_p2)  ;;  %v715_v46 = vld [vmem:[%s1137_s2] ss:$0 sm:$0xff] (!%p189_p2) }
   0xc   : > { %v911_v45 = vpack.c.bf16 (!%p189_p2), %v480_v44, %v479_v43 }
   0xd   : > { %s1142_s26 = smov (!%p217_p3, %s711_s26), 31  ;;  %882 = vmatpush3.bf16.msra.mxu0 %v879_v7 }
   0xe   : > { %s712_s12 = sshll.u32 %s1142_s26, 3  ;;  %884 = vmatprep.subr.bf16.mxu0 %v883_v8  ;;  %924 = vmatpush3.bf16.msra.mxu1 %v887_v11 }
   0xf   : > { %s1023_s20 = scalar_lea.vmem %s1135_s0, %s712_s12  ;;  %917 = vmatprep.subr.bf16.mxu1 %v891_v16  ;;  %s1098_s25 = scalar_lea.vmem %s1140_s5, %s712_s12 }
  0x10   : > { %v228_v14 = vld [vmem:[%s1023_s20] sm:$0xff]  ;;  %v229_v15 = vld [vmem:[%s1023_s20 + $0x8] sm:$0xff]  ;;  %v230_v17 = vld [vmem:[%s1023_s20 + $0x10] sm:$0xff] }
  0x11   : > { %795 = vmatprep.mubr.msk.f32.mxu0 %vm255_vm0, %v228_v14  ;;  %v231_v20 = vld [vmem:[%s1023_s20 + $0x18] sm:$0xff]  ;;  %v232_v22 = vld [vmem:[%s1023_s20 + $0x20] sm:$0xff]  ;;  %v233_v25 = vld [vmem:[%s1023_s20 + $0x28] sm:$0xff] }
  0x12   : > { %796 = vmatmul.mubr.msk.f32.vlgmr.msra.gmra.mrb[0].mxu0 %vm255_vm0, %v229_v15  ;;  %925 = vmatpush3.bf16.msra.mxu1 %v891_v16  ;;  %v234_v27 = vld [vmem:[%s1023_s20 + $0x30] sm:$0xff]  ;;  %v235_v30 = vld [vmem:[%s1023_s20 + $0x38] sm:$0xff]  ;;  %v236_v32 = vld [vmem:[%s1023_s20 + $0x40] sm:$0xff] }
  0x13   : > { %798 = vmatprep.mubr.msk.f32.mxu0 %vm255_vm0, %v230_v17  ;;  %886 = vmatpush3.bf16.msra.mxu0 %v883_v8  ;;  %v237_v35 = vld [vmem:[%s1023_s20 + $0x48] sm:$0xff]  ;;  %v238_v37 = vld [vmem:[%s1023_s20 + $0x50] sm:$0xff]  ;;  %v239_v38 = vld [vmem:[%s1023_s20 + $0x58] sm:$0xff] }
  0x14   : > { %888 = vmatprep.subr.bf16.mxu0 %v887_v11  ;;  %918 = vmatprep.subr.bf16.mxu1 %v895_v21  ;;  %v240_v39 = vld [vmem:[%s1023_s20 + $0x60] sm:$0xff]  ;;  %v241_v40 = vld [vmem:[%s1023_s20 + $0x68] sm:$0xff]  ;;  %v242_v41 = vld [vmem:[%s1023_s20 + $0x70] sm:$0xff] }
  0x15   : > { %v243_v42 = vld [vmem:[%s1023_s20 + $0x78] sm:$0xff] }
  0x16   : > { %799 = vmatmul.mubr.msk.f32.gmra.mrb[2].mxu0 %vm255_vm0, %v231_v20  ;;  %926 = vmatpush3.bf16.msra.mxu1 %v895_v21 }
  0x17   : > { %801 = vmatprep.mubr.msk.f32.mxu0 %vm255_vm0, %v232_v22  ;;  %890 = vmatpush3.bf16.msra.mxu0 %v887_v11 }
  0x18   : > { %892 = vmatprep.subr.bf16.mxu0 %v891_v16  ;;  %919 = vmatprep.subr.bf16.mxu1 %v899_v26 }
  0x1a   : > { %802 = vmatmul.mubr.msk.f32.gmra.mrb[4].mxu0 %vm255_vm0, %v233_v25  ;;  %927 = vmatpush3.bf16.msra.mxu1 %v899_v26 }
  0x1b   : > { %804 = vmatprep.mubr.msk.f32.mxu0 %vm255_vm0, %v234_v27  ;;  %894 = vmatpush3.bf16.msra.mxu0 %v891_v16 }
  0x1c   : > { %896 = vmatprep.subr.bf16.mxu0 %v895_v21  ;;  %920 = vmatprep.subr.bf16.mxu1 %v903_v31 }
  0x1e   : > { %805 = vmatmul.mubr.msk.f32.gmra.mrb[6].mxu0 %vm255_vm0, %v235_v30  ;;  %928 = vmatpush3.bf16.msra.mxu1 %v903_v31 }
  0x1f   : > { %807 = vmatprep.mubr.msk.f32.mxu0 %vm255_vm0, %v236_v32  ;;  %898 = vmatpush3.bf16.msra.mxu0 %v895_v21 }
  0x20   : > { %900 = vmatprep.subr.bf16.mxu0 %v899_v26  ;;  %921 = vmatprep.subr.bf16.mxu1 %v907_v36 }
  0x22   : > { %808 = vmatmul.mubr.msk.f32.gmra.mrb[8].mxu0 %vm255_vm0, %v237_v35  ;;  %929 = vmatpush3.bf16.msra.mxu1 %v907_v36 }
  0x23   : > { %810 = vmatprep.mubr.msk.f32.mxu0 %vm255_vm0, %v238_v37  ;;  %902 = vmatpush3.bf16.msra.mxu0 %v899_v26 }
  0x24   : > { %904 = vmatprep.subr.bf16.mxu0 %v903_v31  ;;  %922 = vmatprep.subr.bf16.mxu1 %v911_v45 }
  0x26   : > { %811 = vmatmul.mubr.msk.f32.gmra.mrb[10].mxu0 %vm255_vm0, %v239_v38  ;;  %930 = vmatpush3.bf16.msra.mxu1 %v911_v45 }
  0x27   : > { %813 = vmatprep.mubr.msk.f32.mxu0 %vm255_vm0, %v240_v39  ;;  %906 = vmatpush3.bf16.msra.mxu0 %v903_v31  ;;  %v732_v31 = vld [vmem:[%s1139_s4] ss:$0 sm:$0xff] }
  0x28   : > { %908 = vmatprep.subr.bf16.mxu0 %v907_v36 }
  0x2a   : > { %814 = vmatmul.mubr.msk.f32.gmra.mrb[12].mxu0 %vm255_vm0, %v241_v40 }
  0x2b   : > { %816 = vmatprep.mubr.msk.f32.mxu0 %vm255_vm0, %v242_v41  ;;  %910 = vmatpush3.bf16.msra.mxu0 %v907_v36 }
  0x2c   : > { %912 = vmatprep.subr.bf16.mxu0 %v911_v45 }
  0x2e   : > { %817 = vmatmul.mubr.msk.f32.gmra.mrb[14].mxu0 %vm255_vm0, %v243_v42 }
  0x2f   : > { %914 = vmatpush3.bf16.msra.mxu0 %v911_v45 }
  0xe5   : > { %v797_v47 = vpop.f32.mrb[0].mxu0 }
  0xe6   : > { %v376_v48 = vadd.f32 %v797_v47, %v715_v46  ;;  %v370_v49 = vpop.f32.mrb[1].mxu0 }
  0xe7   : > { %v371_v50 = vadd.f32 %v715_v46, %v370_v49 }
  0xe8   : > { %v450_v53 = vmax.f32 %v376_v48, 0.0 }
  0xe9   : > { %v449_v51 = vmax.f32 %v371_v50, 0.0  ;;  %v800_v52 = vpop.f32.mrb[2].mxu0 }
  0xea   : > { %v386_v54 = vadd.f32 %v800_v52, %v715_v46  ;;  %v380_v55 = vpop.f32.mrb[3].mxu0 }
  0xeb   : > { %v381_v56 = vadd.f32 %v715_v46, %v380_v55  ;;  %851 = vmatprep.mubr.f32.mxu0 %v449_v51 }
  0xec   : > { %852 = vmatmul.mubr.f32.vlgmr.msra.gmra.mrb[16].mxu0 %v450_v53  ;;  %v452_v59 = vmax.f32 %v386_v54, 0.0 }
  0xed   : > { %v451_v57 = vmax.f32 %v381_v56, 0.0  ;;  %v803_v58 = vpop.f32.mrb[4].mxu0 }
  0xee   : > { %v396_v60 = vadd.f32 %v803_v58, %v715_v46  ;;  %v390_v61 = vpop.f32.mrb[5].mxu0 }
  0xef   : > { %v391_v62 = vadd.f32 %v715_v46, %v390_v61  ;;  %854 = vmatprep.mubr.f32.mxu0 %v451_v57 }
  0xf0   : > { %855 = vmatmul.mubr.f32.gmra.mrb[18].mxu0 %v452_v59  ;;  %v454_v1 = vmax.f32 %v396_v60, 0.0 }
  0xf1   : > { %v453_v63 = vmax.f32 %v391_v62, 0.0  ;;  %v806_v0 = vpop.f32.mrb[6].mxu0 }
  0xf2   : > { %v406_v2 = vadd.f32 %v806_v0, %v715_v46  ;;  %v400_v3 = vpop.f32.mrb[7].mxu0 }
  0xf3   : > { %857 = vmatprep.mubr.f32.mxu0 %v453_v63  ;;  %v401_v4 = vadd.f32 %v715_v46, %v400_v3 }
  0xf4   : > { %858 = vmatmul.mubr.f32.gmra.mrb[20].mxu0 %v454_v1  ;;  %v456_v7 = vmax.f32 %v406_v2, 0.0 }
  0xf5   : > { %v809_v5 = vpop.f32.mrb[8].mxu0  ;;  %v455_v6 = vmax.f32 %v401_v4, 0.0 }
  0xf6   : > { %v416_v8 = vadd.f32 %v809_v5, %v715_v46  ;;  %v410_v9 = vpop.f32.mrb[9].mxu0 }
  0xf7   : > { %v411_v10 = vadd.f32 %v715_v46, %v410_v9  ;;  %860 = vmatprep.mubr.f32.mxu1 %v455_v6 }
  0xf8   : > { %861 = vmatmul.mubr.f32.vlgmr.msra.gmra.mrb[0].mxu1 %v456_v7  ;;  %v458_v13 = vmax.f32 %v416_v8, 0.0 }
  0xf9   : > { %v457_v11 = vmax.f32 %v411_v10, 0.0  ;;  %v812_v12 = vpop.f32.mrb[10].mxu0 }
  0xfa   : > { %v426_v14 = vadd.f32 %v812_v12, %v715_v46  ;;  %v420_v15 = vpop.f32.mrb[11].mxu0 }
  0xfb   : > { %v421_v16 = vadd.f32 %v715_v46, %v420_v15  ;;  %863 = vmatprep.mubr.f32.mxu1 %v457_v11 }
  0xfc   : > { %864 = vmatmul.mubr.f32.gmra.mrb[2].mxu1 %v458_v13  ;;  %v460_v19 = vmax.f32 %v426_v14, 0.0 }
  0xfd   : > { %v459_v17 = vmax.f32 %v421_v16, 0.0  ;;  %v815_v18 = vpop.f32.mrb[12].mxu0 }
  0xfe   : > { %v436_v20 = vadd.f32 %v815_v18, %v715_v46  ;;  %v430_v21 = vpop.f32.mrb[13].mxu0 }
  0xff   : > { %v431_v22 = vadd.f32 %v715_v46, %v430_v21  ;;  %866 = vmatprep.mubr.f32.mxu1 %v459_v17 }
 0x100   : > { %867 = vmatmul.mubr.f32.gmra.mrb[4].mxu1 %v460_v19  ;;  %v462_v25 = vmax.f32 %v436_v20, 0.0 }
 0x101   : > { %v461_v23 = vmax.f32 %v431_v22, 0.0  ;;  %v818_v24 = vpop.f32.mrb[14].mxu0 }
 0x102   : > { %v446_v26 = vadd.f32 %v818_v24, %v715_v46  ;;  %v440_v27 = vpop.f32.mrb[15].mxu0 }
 0x103   : > { %v441_v28 = vadd.f32 %v715_v46, %v440_v27  ;;  %869 = vmatprep.mubr.f32.mxu1 %v461_v23 }
 0x104   : > { %870 = vmatmul.mubr.f32.gmra.mrb[6].mxu1 %v462_v25  ;;  %v464_v30 = vmax.f32 %v446_v26, 0.0 }
 0x105   : > { %v463_v29 = vmax.f32 %v441_v28, 0.0 }
 0x107   : > { %872 = vmatprep.mubr.f32.mxu1 %v463_v29 }
 0x108   : > { %873 = vmatmul.mubr.f32.gmra.mrb[8].mxu1 %v464_v30 }
 0x1bf   : > { %v853_v32 = vpop.f32.mrb[16].mxu0 }
 0x1c0   : > { %v560_v33 = vadd.f32 %v853_v32, %v732_v31  ;;  %v554_v34 = vpop.f32.mrb[17].mxu0 }
 0x1c1   : > { %v555_v35 = vadd.f32 %v732_v31, %v554_v34 }
 0x1c2   : > { %635 = vst.msk [vmem:[%s1098_s25 + $0x8] sm:$0xff] %vm633_vm1, %v560_v33 }
 0x1c3   : > { %634 = vst.msk [vmem:[%s1098_s25] sm:$0xff] %vm633_vm1, %v555_v35  ;;  %v856_v36 = vpop.f32.mrb[18].mxu0 }
 0x1c4   : > { %v570_v37 = vadd.f32 %v856_v36, %v732_v31  ;;  %v564_v38 = vpop.f32.mrb[19].mxu0 }
 0x1c5   : > { %v565_v39 = vadd.f32 %v732_v31, %v564_v38 }
 0x1c6   : > { %637 = vst.msk [vmem:[%s1098_s25 + $0x18] sm:$0xff] %vm633_vm1, %v570_v37 }
 0x1c7   : > { %636 = vst.msk [vmem:[%s1098_s25 + $0x10] sm:$0xff] %vm633_vm1, %v565_v39  ;;  %v859_v40 = vpop.f32.mrb[20].mxu0 }
 0x1c8   : > { %v580_v41 = vadd.f32 %v859_v40, %v732_v31  ;;  %v574_v42 = vpop.f32.mrb[21].mxu0 }
 0x1c9   : > { %v575_v43 = vadd.f32 %v732_v31, %v574_v42 }
 0x1ca   : > { %639 = vst.msk [vmem:[%s1098_s25 + $0x28] sm:$0xff] %vm633_vm1, %v580_v41 }
 0x1cb   : > { %638 = vst.msk [vmem:[%s1098_s25 + $0x20] sm:$0xff] %vm633_vm1, %v575_v43  ;;  %v862_v44 = vpop.f32.mrb[0].mxu1 }
 0x1cc   : > { %v590_v45 = vadd.f32 %v862_v44, %v732_v31  ;;  %v584_v46 = vpop.f32.mrb[1].mxu1 }
 0x1cd   : > { %v585_v47 = vadd.f32 %v732_v31, %v584_v46 }
 0x1ce   : > { %641 = vst.msk [vmem:[%s1098_s25 + $0x38] sm:$0xff] %vm633_vm1, %v590_v45 }
 0x1cf   : > { %640 = vst.msk [vmem:[%s1098_s25 + $0x30] sm:$0xff] %vm633_vm1, %v585_v47  ;;  %v865_v48 = vpop.f32.mrb[2].mxu1 }
 0x1d0   : > { %v600_v49 = vadd.f32 %v865_v48, %v732_v31  ;;  %v594_v50 = vpop.f32.mrb[3].mxu1 }
 0x1d1   : > { %v595_v51 = vadd.f32 %v732_v31, %v594_v50 }
 0x1d2   : > { %643 = vst.msk [vmem:[%s1098_s25 + $0x48] sm:$0xff] %vm633_vm1, %v600_v49 }
 0x1d3   : > { %642 = vst.msk [vmem:[%s1098_s25 + $0x40] sm:$0xff] %vm633_vm1, %v595_v51  ;;  %v868_v52 = vpop.f32.mrb[4].mxu1 }
 0x1d4   : > { %v610_v53 = vadd.f32 %v868_v52, %v732_v31  ;;  %v604_v54 = vpop.f32.mrb[5].mxu1 }
 0x1d5   : > { %v605_v55 = vadd.f32 %v732_v31, %v604_v54 }
 0x1d6   : > { %645 = vst.msk [vmem:[%s1098_s25 + $0x58] sm:$0xff] %vm633_vm1, %v610_v53 }
 0x1d7   : > { %644 = vst.msk [vmem:[%s1098_s25 + $0x50] sm:$0xff] %vm633_vm1, %v605_v55  ;;  %v871_v56 = vpop.f32.mrb[6].mxu1 }
 0x1d8   : > { %v620_v57 = vadd.f32 %v871_v56, %v732_v31  ;;  %v614_v58 = vpop.f32.mrb[7].mxu1 }
 0x1d9   : > { %v615_v59 = vadd.f32 %v732_v31, %v614_v58 }
 0x1da   : > { %647 = vst.msk [vmem:[%s1098_s25 + $0x68] sm:$0xff] %vm633_vm1, %v620_v57 }
 0x1db   : > { %646 = vst.msk [vmem:[%s1098_s25 + $0x60] sm:$0xff] %vm633_vm1, %v615_v59  ;;  %v874_v60 = vpop.f32.mrb[8].mxu1 }
 0x1dc   : > { %v630_v61 = vadd.f32 %v874_v60, %v732_v31  ;;  %v624_v62 = vpop.f32.mrb[9].mxu1 }
 0x1dd   : > { %v625_v63 = vadd.f32 %v732_v31, %v624_v62 }
 0x1de   : > { %649 = vst.msk [vmem:[%s1098_s25 + $0x78] sm:$0xff] %vm633_vm1, %v630_v61 }
 0x1df   : > { %648 = vst.msk [vmem:[%s1098_s25 + $0x70] sm:$0xff] %vm633_vm1, %v625_v63 }
 0x1e0 PF: > { %s15_s18 = sadd.s32 1, %s945_s18  }
 0x1e1   : > { %p12_p4 = scmp.ge.s32.totalorder %s15_s18, 4  }
 0x1e3   :  { %14 = sbr.rel (!%p12_p4) target bundleno = 1 (0x1), region = 70 }

</bundles_post_ra>
